<compile_context>
chip_gen: v7x
topology: tpu7x:2x2x1
jax: 0.10.0
libtpu: 0.0.40
codegen_flags: <defaults>
</compile_context>

<pallas_src>
import functools

import jax
import jax.numpy as jnp
from jax.experimental import pallas as pl
from jax.experimental.pallas import tpu as pltpu


def _round_up(x, m):
    return (x + m - 1) // m * m


# ---------------------------------------------------------------------------
# MoE kernel: out[t] = sum_e dense_w[t, e] * (x[t] @ W[e] + b[e])
# Grid: (token tiles, experts); expert axis is the reduction (last).
# ---------------------------------------------------------------------------
def moe_kernel(flags_ref, x_ref, w_ref, b_ref, wt_ref, o_ref, acc_ref=None,
               *, num_experts, weights_resident=True):
    i = pl.program_id(0)
    e = pl.program_id(1)
    acc = o_ref if acc_ref is None else acc_ref

    @pl.when(e == 0)
    def _():
        acc[...] = jnp.zeros_like(acc)

    # Skip experts no token in this tile routed to (flat flags in SMEM).
    @pl.when(flags_ref[i * num_experts + e] != 0)
    def _():
        we = w_ref[e] if weights_resident else w_ref[0]        # (D, D) bf16
        h = jnp.dot(x_ref[...], we,
                    preferred_element_type=jnp.float32) + b_ref[0]
        # (tm, 1) f32 routing weights for expert e; scale stays in f32.
        acc[...] += (wt_ref[0] * h).astype(acc.dtype)

    if acc_ref is not None:
        @pl.when(e == pl.num_programs(1) - 1)
        def _():
            o_ref[...] = acc_ref[...].astype(o_ref.dtype)


def moe_forward(x, wg, bg, w, b, num_experts_per_tok, *, tm=256):
    B, S, K, D = x.shape
    E = w.shape[0]
    T = B * S * K
    xf = x.reshape(T, D)

    # ---- gate + routing (tiny, lane-sparse -> plain XLA) ----
    logits = (jnp.dot(xf.astype(jnp.float32), wg.astype(jnp.float32))
              + bg.reshape(1, E).astype(jnp.float32))
    top_w, top_i = jax.lax.top_k(logits, num_experts_per_tok)
    top_w = jax.nn.softmax(top_w, axis=-1)                     # f32
    # Scatter-free dense (T, E) routing weights.
    one_hot = top_i[:, :, None] == jnp.arange(E, dtype=top_i.dtype)[None, None, :]
    dense_w = jnp.sum(jnp.where(one_hot, top_w[:, :, None], 0.0), axis=1)

    # ---- token tiling / tail padding ----
    tm = _round_up(min(tm, _round_up(T, 8)), 8)
    T_pad = _round_up(T, tm)
    num_tiles = T_pad // tm
    pad = T_pad - T
    xf_p = jnp.pad(xf, ((0, pad), (0, 0))) if pad else xf
    dw_p = jnp.pad(dense_w, ((0, pad), (0, 0))) if pad else dense_w

    # Per-(token-tile, expert) activity flags, flattened to 1-D so SMEM does
    # not pad the expert axis up to 128 words.
    flags = (dw_p.reshape(num_tiles, tm, E) > 0.0).any(axis=1)
    flags = flags.reshape(num_tiles * E).astype(jnp.int32)
    # Routing weights laid out (E, T_pad, 1): kernel reads a (tm, 1) column.
    wt = dw_p.T.reshape(E, T_pad, 1)

    # bf16 matmul operands, f32 accumulation.
    x_bf = xf_p.astype(jnp.bfloat16)
    w_bf = w.astype(jnp.bfloat16)
    b3 = b.astype(jnp.float32).reshape(E, 1, D)

    # Keep all expert weights VMEM-resident when they fit (constant index_map
    # -> fetched once); otherwise stream W[e] per grid step.
    resident_bytes = E * D * D * 2
    weights_resident = resident_bytes <= 40 * 1024 * 1024
    if weights_resident:
        w_spec = pl.BlockSpec((E, D, D), lambda i, e, flg: (0, 0, 0))
        w_buf_bytes = 2 * resident_bytes
    else:
        # TODO(synk): for very large D (v7x has only 64 MiB VMEM), also tile
        # the output dim (W block (1, D, tn), extra grid axis) instead of
        # streaming the full D x D weight per step.
        w_spec = pl.BlockSpec((1, D, D), lambda i, e, flg: (e, 0, 0))
        w_buf_bytes = 2 * D * D * 2

    out_dtype = x.dtype
    use_scratch = out_dtype != jnp.float32      # f32 output: accumulate in-place
    scratch_shapes = [pltpu.VMEM((tm, D), jnp.float32)] if use_scratch else []

    est = (w_buf_bytes
           + 2 * tm * D * 2                                   # x tiles (bf16)
           + 2 * tm * D * jnp.dtype(out_dtype).itemsize       # out tiles
           + (tm * D * 4 if use_scratch else 0)               # f32 accumulator
           + 2 * (D * 4 + tm * 4 + E * 4))                    # bias / wt / flags
    vmem_limit = int(min(max(32 * 1024 * 1024, est * 5 // 4), 64 * 1024 * 1024))

    kernel = functools.partial(moe_kernel, num_experts=E,
                               weights_resident=weights_resident)

    out = pl.pallas_call(
        kernel,
        out_shape=jax.ShapeDtypeStruct((T_pad, D), out_dtype),
        grid_spec=pltpu.PrefetchScalarGridSpec(
            num_scalar_prefetch=1,
            grid=(num_tiles, E),
            in_specs=[
                pl.BlockSpec((tm, D), lambda i, e, flg: (i, 0)),        # x tile
                w_spec,                                                 # W
                pl.BlockSpec((1, 1, D), lambda i, e, flg: (e, 0, 0)),   # b[e]
                pl.BlockSpec((1, tm, 1), lambda i, e, flg: (e, i, 0)),  # wt[e]
            ],
            out_specs=pl.BlockSpec((tm, D), lambda i, e, flg: (i, 0)),
            scratch_shapes=scratch_shapes,
        ),
        compiler_params=pltpu.CompilerParams(
            dimension_semantics=("parallel", "arbitrary"),
            vmem_limit_bytes=vmem_limit,
        ),
    )(flags, x_bf, w_bf, b3, wt)

    return out[:T].reshape(B, S, K, D)


# ---------------------------------------------------------------------------
# Pure-JAX reference mirroring the PyTorch forward (same bf16 matmul operands,
# f32 accumulation, f32 routing-weight scale).
# ---------------------------------------------------------------------------
def moe_reference(x, wg, bg, w, b, num_experts_per_tok,
                  *, compute_dtype=jnp.bfloat16):
    B, S, K, D = x.shape
    E = w.shape[0]
    xf = x.reshape(-1, D)
    logits = (jnp.dot(xf.astype(jnp.float32), wg.astype(jnp.float32))
              + bg.reshape(1, E).astype(jnp.float32))
    top_w, top_i = jax.lax.top_k(logits, num_experts_per_tok)
    top_w = jax.nn.softmax(top_w, axis=-1)
    xc = xf.astype(compute_dtype)
    out = jnp.zeros((xf.shape[0], D), jnp.float32)
    for e in range(E):
        sel = jnp.sum(jnp.where(top_i == e, top_w, 0.0), axis=-1, keepdims=True)
        h = (jnp.dot(xc, w[e].astype(compute_dtype),
                     preferred_element_type=jnp.float32)
             + b[e].astype(jnp.float32))
        out = out + sel * h
    return out.astype(x.dtype).reshape(B, S, K, D)


if __name__ == "__main__":
    B, S, K, D = 2, 4, 8, 32   # batch, seq, keypoints, hidden
    E, TOPK = 4, 2             # num experts, num_experts_per_tok

    key = jax.random.PRNGKey(0)
    kx, kwg, kbg, kw, kb = jax.random.split(key, 5)
    x = jax.random.normal(kx, (B, S, K, D), jnp.float32)
    wg = jax.random.normal(kwg, (D, E), jnp.float32) * 0.1
    bg = jax.random.normal(kbg, (1, E), jnp.float32) * 0.1
    w = jax.random.normal(kw, (E, D, D), jnp.float32) * (1.0 / jnp.sqrt(D))
    b = jax.random.normal(kb, (E, D), jnp.float32) * 0.1

    out = moe_forward(x, wg, bg, w, b, TOPK)
    out = jax.block_until_ready(out)

    ref = moe_reference(x, wg, bg, w, b, TOPK)
    assert out.shape == x.shape and out.dtype == x.dtype
    assert jnp.allclose(out, ref, atol=2e-3, rtol=2e-3), "mismatch vs reference"

    print("KERNEL_OK")
</pallas_src>

<mosaic_0001>
module attributes {stable_mosaic.version = 11 : i64} {
  func.func @moe_kernel(%arg0: i32, %arg1: i32, %arg2: memref<4xi32, #tpu.memory_space<smem>>, %arg3: memref<64x32xbf16, #tpu.memory_space<vmem>>, %arg4: memref<4x32x32xbf16, #tpu.memory_space<vmem>>, %arg5: memref<1x1x32xf32, #tpu.memory_space<vmem>>, %arg6: memref<1x64x1xf32, #tpu.memory_space<vmem>>, %arg7: memref<64x32xf32, #tpu.memory_space<vmem>>) attributes {dimension_semantics = [#tpu.dimension_semantics<parallel>, #tpu.dimension_semantics<arbitrary>], iteration_bounds = array<i64: 1, 4>, scalar_prefetch = 1 : i64, scratch_operands = 0 : i64, tpu.core_type = #tpu.core_type<tc>, window_params = [{transform_indices = @transform_0, window_bounds = array<i64: 64, 32>}, {pipeline_mode = #tpu.pipeline_mode<synchronous>, transform_indices = @transform_1, window_bounds = array<i64: 4, 32, 32>}, {transform_indices = @transform_2, window_bounds = array<i64: 1, 1, 32>}, {transform_indices = @transform_3, window_bounds = array<i64: 1, 64, 1>}, {transform_indices = @transform_4, window_bounds = array<i64: 64, 32>}]} {
    %c0_i32 = arith.constant 0 : i32
    %0 = arith.cmpi eq, %arg1, %c0_i32 : i32
    %1 = arith.extui %0 : i1 to i32
    %c0_i32_0 = arith.constant 0 : i32
    %2 = arith.cmpi ne, %1, %c0_i32_0 : i32
    scf.if %2 {
      %cst = arith.constant 0.000000e+00 : f32
      %10 = vector.broadcast %cst : f32 to vector<64x32xf32>
      %c0 = arith.constant 0 : index
      %c0_3 = arith.constant 0 : index
      %11 = vector.load %arg7[%c0, %c0_3] : memref<64x32xf32, #tpu.memory_space<vmem>>, vector<64x32xf32>
      tpu.vector_store %arg7[%c0, %c0_3], %10 {strides = array<i32>} : memref<64x32xf32, #tpu.memory_space<vmem>>, vector<64x32xf32>,
    } else {
    }
    %c4_i32 = arith.constant 4 : i32
    %3 = arith.muli %arg0, %c4_i32 : i32
    %4 = arith.addi %3, %arg1 : i32
    %5 = arith.index_cast %4 : i32 to index
    %6 = memref.load %arg2[%5] : memref<4xi32, #tpu.memory_space<smem>>
    %c0_i32_1 = arith.constant 0 : i32
    %7 = arith.cmpi ne, %6, %c0_i32_1 : i32
    %8 = arith.extui %7 : i1 to i32
    %c0_i32_2 = arith.constant 0 : i32
    %9 = arith.cmpi ne, %8, %c0_i32_2 : i32
    scf.if %9 {
      %10 = arith.index_cast %arg1 : i32 to index
      %c0 = arith.constant 0 : index
      %c0_3 = arith.constant 0 : index
      %11 = vector.load %arg4[%10, %c0, %c0_3] : memref<4x32x32xbf16, #tpu.memory_space<vmem>>, vector<1x32x32xbf16>
      %12 = vector.shape_cast %11 : vector<1x32x32xbf16> to vector<32x32xbf16>
      %c0_4 = arith.constant 0 : index
      %c0_5 = arith.constant 0 : index
      %13 = vector.load %arg3[%c0_4, %c0_5] : memref<64x32xbf16, #tpu.memory_space<vmem>>, vector<64x32xbf16>
      %cst = arith.constant dense<0.000000e+00> : vector<64x32xf32>
      %14 = tpu.matmul %13, %12, %cst {dimension_numbers = #tpu.dot_dimension_numbers<[1], [0], [0], [1], [0, 0, 1, 1], [], []>} : vector<64x32xbf16>, vector<32x32xbf16>, vector<64x32xf32> -> vector<64x32xf32>
      %c0_6 = arith.constant 0 : index
      %c0_7 = arith.constant 0 : index
      %c0_8 = arith.constant 0 : index
      %15 = vector.load %arg5[%c0_6, %c0_7, %c0_8] : memref<1x1x32xf32, #tpu.memory_space<vmem>>, vector<1x1x32xf32>
      %16 = vector.shape_cast %15 : vector<1x1x32xf32> to vector<1x32xf32>
      %17 = vector.broadcast %16 : vector<1x32xf32> to vector<64x32xf32>
      %18 = arith.addf %14, %17 : vector<64x32xf32>
      %c0_9 = arith.constant 0 : index
      %c0_10 = arith.constant 0 : index
      %19 = vector.load %arg7[%c0_9, %c0_10] : memref<64x32xf32, #tpu.memory_space<vmem>>, vector<64x32xf32>
      %c0_11 = arith.constant 0 : index
      %c0_12 = arith.constant 0 : index
      %c0_13 = arith.constant 0 : index
      %20 = vector.load %arg6[%c0_11, %c0_12, %c0_13] : memref<1x64x1xf32, #tpu.memory_space<vmem>>, vector<1x64x1xf32>
      %21 = vector.shape_cast %20 : vector<1x64x1xf32> to vector<64x1xf32>
      %22 = vector.broadcast %21 : vector<64x1xf32> to vector<64x32xf32>
      %23 = arith.mulf %22, %18 : vector<64x32xf32>
      %24 = arith.addf %19, %23 : vector<64x32xf32>
      %c0_14 = arith.constant 0 : index
      %c0_15 = arith.constant 0 : index
      %25 = vector.load %arg7[%c0_14, %c0_15] : memref<64x32xf32, #tpu.memory_space<vmem>>, vector<64x32xf32>
      tpu.vector_store %arg7[%c0_14, %c0_15], %24 {strides = array<i32>} : memref<64x32xf32, #tpu.memory_space<vmem>>, vector<64x32xf32>,
    } else {
    }
    return
  }
  func.func @transform_0(%arg0: i32, %arg1: i32, %arg2: memref<4xi32, #tpu.memory_space<smem>>) -> (i32, i32) {
    %c0_i32 = arith.constant 0 : i32
    %c0_i32_0 = arith.constant 0 : i32
    return %arg0, %c0_i32 : i32, i32
  }
  func.func @transform_1(%arg0: i32, %arg1: i32, %arg2: memref<4xi32, #tpu.memory_space<smem>>) -> (i32, i32, i32) {
    %c0_i32 = arith.constant 0 : i32
    %c0_i32_0 = arith.constant 0 : i32
    %c0_i32_1 = arith.constant 0 : i32
    %c0_i32_2 = arith.constant 0 : i32
    return %c0_i32, %c0_i32_0, %c0_i32_1 : i32, i32, i32
  }
  func.func @transform_2(%arg0: i32, %arg1: i32, %arg2: memref<4xi32, #tpu.memory_space<smem>>) -> (i32, i32, i32) {
    %c0_i32 = arith.constant 0 : i32
    %c0_i32_0 = arith.constant 0 : i32
    %c0_i32_1 = arith.constant 0 : i32
    return %arg1, %c0_i32, %c0_i32_0 : i32, i32, i32
  }
  func.func @transform_3(%arg0: i32, %arg1: i32, %arg2: memref<4xi32, #tpu.memory_space<smem>>) -> (i32, i32, i32) {
    %c0_i32 = arith.constant 0 : i32
    %c0_i32_0 = arith.constant 0 : i32
    return %arg1, %arg0, %c0_i32 : i32, i32, i32
  }
  func.func @transform_4(%arg0: i32, %arg1: i32, %arg2: memref<4xi32, #tpu.memory_space<smem>>) -> (i32, i32) {
    %c0_i32 = arith.constant 0 : i32
    %c0_i32_0 = arith.constant 0 : i32
    return %arg0, %c0_i32 : i32, i32
  }
}

</mosaic_0001>

<bundles_post_ra>
// kernel: tpu_custom_call.1
= control target key start
LH: loop header
LB: loop body
LE: loop exit
PB: predicated region body
PF: predicated region fallthrough
CT: control target
= control target key end

     0   :  { %s914_s0 = inlined_call_operand.vmem [shape: s32[4], index: 0, kind: input, shape index: {}]   ;;  %s915_s1 = inlined_call_operand.vmem [shape: bf16[64,32], index: 1, kind: input, shape index: {}]   ;;  %s916_s2 = inlined_call_operand.vmem [shape: bf16[4,32,32], index: 2, kind: input, shape index: {}]   ;;  %s917_s3 = inlined_call_operand.vmem [shape: f32[4,1,32], index: 3, kind: input, shape index: {}]   ;;  %s918_s4 = inlined_call_operand.vmem [shape: f32[4,64,1], index: 4, kind: input, shape index: {}]   ;;  %s919_s5 = inlined_call_operand.vmem [shape: f32[64,32], index: 5, kind: output, shape index: {}]  }
   0x1   :  { %s10_s20 = sshll.u32 %s914_s0, 4  ;;  %s11_s20 = int_to_ptr.vmem [resolvable:$true] %s10_s20 }
   0x2   :  { %s682_s21 = scalar_lea.vmem %s11_s20, 16  ;;  %p687_p1 = scmp.lt.s32.totalorder %s11_s20, %s11_s20 }
   0x3   :  { %p683_p0 = scmp.ne.s32.totalorder %s11_s20, %s682_s21  ;;  %p688_p2 = scmp.lt.s32.totalorder %s682_s21, %s682_s21 }
   0x5   :  { %p689_p3 = por %p688_p2, %p687_p1 }
   0x7   :  { %p690_p4 = pnand %p689_p3, %p683_p0 }
   0x9   :  { %693 = shalt.err (!%p690_p4)  }
   0xa   :  { %s720_s22 = smov [#allocation3]  }
   0xb   :  { %13 = dma.vmem_to_smem %s11_s20, 16, %s720_s22, [#allocation2] }
   0xc   :  { %706 = dma.done.wait [#allocation2], 16 }
   0xd   :  { %707 = vsyncadd [#allocation2], 4294967280 }
   0xe   :  { %15 = sfence }
   0xf   :  { %s756_s23 = smov 0   ;;  %s758_s24 = smov 0  }
  0x10   :  { %s760_s25 = smov 0  }
  0x11 LB: > { %s30_s0 = sadd.s32 1, %s714_s24  ;;  %p601_p5 = scmp.ge.s32.totalorder %s718_s25, 1  ;;  %s718_s25 = sphi %s760_s25, %s21_s25   ;;  %s714_s24 = sphi %s758_s24, %s921_s24   ;;  %s710_s23 = sphi %s756_s23, %s920_s23  }
  0x12   : > { %p31_p6 = scmp.ge.s32.totalorder %s30_s0, 4  ;;  %p207_p7 = scmp.lt.s32.totalorder %s718_s25, 5 }
  0x14   : > { %s923_s0 = smov (%p31_p6, %s30_s0), 0  ;;  %p208_p8 = pnand %p601_p5, %p207_p7 }
  0x15   : > { %p251_p9 = scmp.lt.s32.totalorder (!%p208_p8), %s710_s23, 3  ;;  %p604_p10 = scmp.ne.s32.totalorder (!%p208_p8), %s710_s23, 0 }
  0x16   : > { %211 = sbr.rel (%p208_p8) target bundleno = 277 (0x115), region = 36 }
  0x1d   : > { %s778_s26 = scalar_select %p251_p9, %s710_s23, 3 }
  0x1e   : > { %274 = sbr.rel (%p604_p10) target bundleno = 37 (0x25), region = 40  ;;  %vm275_vm0 = vcmask (!%p604_p10), 261120   ;;  %v721_v0 = vmov (!%p604_p10), 0.0  }
  0x1f   : > { %s253_s29 = scalar_lea.vmem %s917_s3, %s778_s26  ;;  %s623_s30 = sshll.u32 %s778_s26, 6  ;;  %276 = vst.msk [vmem:[%s919_s5] sm:$0xff] (!%p604_p10), %vm275_vm0, %v721_v0  ;;  %277 = vst.msk [vmem:[%s919_s5 + $0x8] sm:$0xff] (!%p604_p10), %vm275_vm0, %v721_v0 }
  0x20   : > { %s788_s8 = scalar_lea.vmem %s918_s4, %s623_s30  ;;  %278 = vst.msk [vmem:[%s919_s5 + $0x10] sm:$0xff] (!%p604_p10), %vm275_vm0, %v721_v0  ;;  %279 = vst.msk [vmem:[%s919_s5 + $0x18] sm:$0xff] (!%p604_p10), %vm275_vm0, %v721_v0 }
  0x21   : > { %280 = vst.msk [vmem:[%s919_s5 + $0x20] sm:$0xff] (!%p604_p10), %vm275_vm0, %v721_v0  ;;  %281 = vst.msk [vmem:[%s919_s5 + $0x28] sm:$0xff] (!%p604_p10), %vm275_vm0, %v721_v0 }
  0x22   : > { %282 = vst.msk [vmem:[%s919_s5 + $0x30] sm:$0xff] (!%p604_p10), %vm275_vm0, %v721_v0  ;;  %283 = vst.msk [vmem:[%s919_s5 + $0x38] sm:$0xff] (!%p604_p10), %vm275_vm0, %v721_v0 }
  0x25 PF: > { %s286_s30 = sld [smem:[#allocation3 + %s710_s23]] }
  0x2b   : > { %p605_p11 = scmp.eq.s32.totalorder %s286_s30, 0 }
  0x2c   : > { %s624_s6 = sshll.u32 (!%p605_p11), %s710_s23, 4  ;;  %v678_v1 = vld [vmem:[%s915_s1] sm:$0xff] (!%p605_p11)   ;;  %vm345_vm1 = vcmask (!%p605_p11), 261120   ;;  %v679_v2 = vld [vmem:[%s915_s1 + $0x10] sm:$0xff] (!%p605_p11)   ;;  %v722_v5 = vmov (!%p605_p11), 0   ;;  %v680_v8 = vld [vmem:[%s915_s1 + $0x8] sm:$0xff] (!%p605_p11)  }
  0x2d   : > { %290 = sbr.rel (%p605_p11) target bundleno = 277 (0x115), region = 44  ;;  %s293_s12 = scalar_lea.vmem (!%p605_p11), %s916_s2, %s624_s6  ;;  %635 = vmatprep.mubr.msk.bf16.mxu0 (!%p605_p11), %vm345_vm1, %v678_v1  ;;  %639 = vmatprep.mubr.msk.bf16.mxu1 (!%p605_p11), %vm345_vm1, %v679_v2  ;;  %v433_v6 = vld [vmem:[%s788_s8 + $0x10] sm:$0xff] (!%p605_p11)  ;;  %v431_v7 = vld [vmem:[%s788_s8] sm:$0xff] (!%p605_p11)  ;;  %v681_v9 = vld [vmem:[%s915_s1 + $0x18] sm:$0xff] (!%p605_p11)  }
  0x2e   : > { %v676_v3 = vld [vmem:[%s293_s12] sm:$0xff] (!%p605_p11)   ;;  %v677_v4 = vld [vmem:[%s293_s12 + $0x8] sm:$0xff] (!%p605_p11)   ;;  %675 = vset.pattern.permute.xlu1 (!%p605_p11), %v722_v5  ;;  %674 = vset.pattern.permute.xlu0 (!%p605_p11), %v722_v5  ;;  %v434_v10 = vld [vmem:[%s788_s8 + $0x18] sm:$0xff] (!%p605_p11) }
  0x2f   : > { %631 = vmatprep.subr.bf16.mxu0 (!%p605_p11), %v676_v3  ;;  %643 = vmatprep.subr.bf16.mxu1 (!%p605_p11), %v676_v3  ;;  %v432_v11 = vld [vmem:[%s788_s8 + $0x8] sm:$0xff] (!%p605_p11)  ;;  %v435_v13 = vld [vmem:[%s788_s8 + $0x20] sm:$0xff] (!%p605_p11)  ;;  %v438_v14 = vld [vmem:[%s788_s8 + $0x38] sm:$0xff] (!%p605_p11) }
  0x30   : > { %632 = vmatpush3.bf16.msra.mxu0 (!%p605_p11), %v676_v3  ;;  %645 = vmatpush3.bf16.msra.mxu1 (!%p605_p11), %v676_v3  ;;  %v436_v12 = vld [vmem:[%s788_s8 + $0x28] sm:$0xff] (!%p605_p11)  ;;  %v437_v15 = vld [vmem:[%s788_s8 + $0x30] sm:$0xff] (!%p605_p11)  ;;  %v608_v22 = vld [vmem:[%s253_s29] ss:$0 sm:$0xff] (!%p605_p11) }
  0x31   : > { %633 = vmatprep.subr.bf16.mxu0 (!%p605_p11), %v677_v4  ;;  %644 = vmatprep.subr.bf16.mxu1 (!%p605_p11), %v677_v4  ;;  %v425_v30 = vld [vmem:[%s919_s5 + $0x10] sm:$0xff] (!%p605_p11)  ;;  %v423_v38 = vld [vmem:[%s919_s5] sm:$0xff] (!%p605_p11)  ;;  %v426_v47 = vld [vmem:[%s919_s5 + $0x18] sm:$0xff] (!%p605_p11) }
  0x32   : > { %451 = vperm.xlu1 (!%p605_p11), %675, %v433_v6   ;;  %441 = vperm.xlu0 (!%p605_p11), %674, %v431_v7   ;;  %v429_v31 = vld [vmem:[%s919_s5 + $0x30] sm:$0xff] (!%p605_p11)  ;;  %v427_v39 = vld [vmem:[%s919_s5 + $0x20] sm:$0xff] (!%p605_p11)  ;;  %v430_v48 = vld [vmem:[%s919_s5 + $0x38] sm:$0xff] (!%p605_p11) }
  0x33   : > { %v424_v55 = vld [vmem:[%s919_s5 + $0x8] sm:$0xff] (!%p605_p11) }
  0x34   : > { %634 = vmatpush3.bf16.msra.mxu0 %v677_v4  ;;  %646 = vmatpush3.bf16.msra.mxu1 %v677_v4  ;;  %v428_v56 = vld [vmem:[%s919_s5 + $0x28] sm:$0xff] }
  0x36   : > { %456 = vperm.xlu1 %675, %v434_v10   ;;  %446 = vperm.xlu0 %674, %v432_v11  }
  0x37   : > { %636 = vmatmul.mubr.msk.bf16.vlgmr.msra.gmra.mrb[0].mxu0 %vm345_vm1, %v680_v8  ;;  %640 = vmatmul.mubr.msk.bf16.vlgmr.msra.gmra.mrb[0].mxu1 %vm345_vm1, %v681_v9 }
  0x3a   : > { %466 = vperm.xlu1 %675, %v436_v12   ;;  %461 = vperm.xlu0 %674, %v435_v13  }
  0x3e   : > { %476 = vperm.xlu1 %675, %v438_v14   ;;  %471 = vperm.xlu0 %674, %v437_v15  }
  0xb1   : > { %v442_v16 = vpop.permute.xlu0 %441  ;;  %v452_v17 = vpop.permute.xlu1 %451 }
  0xb5   : > { %v447_v18 = vpop.permute.xlu0 %446  ;;  %v457_v19 = vpop.permute.xlu1 %456 }
  0xb9   : > { %v462_v20 = vpop.permute.xlu0 %461  ;;  %v467_v21 = vpop.permute.xlu1 %466 }
  0xbd   : > { %v472_v23 = vpop.permute.xlu0 %471  ;;  %v477_v44 = vpop.permute.xlu1 %476 }
 0x10a   : > { %v637_v24 = vpop.f32.mrb[0].mxu0  ;;  %v641_v25 = vpop.f32.mrb[0].mxu1 }
 0x10b   : > { %v401_v26 = vadd.f32 %v637_v24, %v608_v22  ;;  %v417_v27 = vadd.f32 %v641_v25, %v608_v22  ;;  %v392_v28 = vpop.f32.mrb[1].mxu0  ;;  %v408_v29 = vpop.f32.mrb[1].mxu1 }
 0x10c   : > { %v393_v32 = vadd.f32 %v608_v22, %v392_v28  ;;  %v409_v33 = vadd.f32 %v608_v22, %v408_v29  ;;  %v638_v34 = vpop.f32.mrb[2].mxu0  ;;  %v642_v35 = vpop.f32.mrb[2].mxu1 }
 0x10d   : > { %v481_v36 = vmul.f32 %v452_v17, %v401_v26  ;;  %v485_v37 = vmul.f32 %v472_v23, %v417_v27  ;;  %v404_v40 = vadd.f32 %v638_v34, %v608_v22  ;;  %v420_v41 = vadd.f32 %v642_v35, %v608_v22  ;;  %v395_v42 = vpop.f32.mrb[3].mxu0  ;;  %v411_v43 = vpop.f32.mrb[3].mxu1 }
 0x10e   : > { %v479_v45 = vmul.f32 %v442_v16, %v393_v32  ;;  %v483_v46 = vmul.f32 %v462_v20, %v409_v33  ;;  %v396_v49 = vadd.f32 %v608_v22, %v395_v42  ;;  %v412_v50 = vadd.f32 %v608_v22, %v411_v43 }
 0x10f   : > { %v489_v51 = vadd.f32 %v481_v36, %v425_v30  ;;  %v493_v52 = vadd.f32 %v485_v37, %v429_v31  ;;  %v482_v53 = vmul.f32 %v457_v19, %v404_v40  ;;  %v486_v54 = vmul.f32 %v477_v44, %v420_v41 }
 0x110   : > { %v487_v57 = vadd.f32 %v479_v45, %v423_v38  ;;  %v491_v58 = vadd.f32 %v483_v46, %v427_v39  ;;  %v480_v59 = vmul.f32 %v447_v18, %v396_v49  ;;  %v484_v60 = vmul.f32 %v467_v21, %v412_v50 }
 0x111   : > { %497 = vst.msk [vmem:[%s919_s5 + $0x10] sm:$0xff] %vm345_vm1, %v489_v51  ;;  %501 = vst.msk [vmem:[%s919_s5 + $0x30] sm:$0xff] %vm345_vm1, %v493_v52  ;;  %v490_v61 = vadd.f32 %v482_v53, %v426_v47  ;;  %v494_v62 = vadd.f32 %v486_v54, %v430_v48 }
 0x112   : > { %495 = vst.msk [vmem:[%s919_s5] sm:$0xff] %vm345_vm1, %v487_v57  ;;  %499 = vst.msk [vmem:[%s919_s5 + $0x20] sm:$0xff] %vm345_vm1, %v491_v58  ;;  %v488_v63 = vadd.f32 %v480_v59, %v424_v55  ;;  %v492_v0 = vadd.f32 %v484_v60, %v428_v56 }
 0x113   : > { %498 = vst.msk [vmem:[%s919_s5 + $0x18] sm:$0xff] %vm345_vm1, %v490_v61  ;;  %502 = vst.msk [vmem:[%s919_s5 + $0x38] sm:$0xff] %vm345_vm1, %v494_v62 }
 0x114   : > { %496 = vst.msk [vmem:[%s919_s5 + $0x8] sm:$0xff] %vm345_vm1, %v488_v63  ;;  %500 = vst.msk [vmem:[%s919_s5 + $0x28] sm:$0xff] %vm345_vm1, %v492_v0 }
 0x115 PF: > { %s21_s25 = sadd.s32 1, %s718_s25   ;;  %s920_s23 = smov %s714_s24 }
 0x116   : > { %p18_p12 = scmp.ge.s32.totalorder %s21_s25, 6   ;;  %s921_s24 = smov %s923_s0 }
 0x118   :  { %20 = sbr.rel (!%p18_p12) target bundleno = 17 (0x11), region = 81 }

</bundles_post_ra>
